<compile_context>
chip_gen: v5e
topology: v5e:2x2
jax: 0.10.0
libtpu: 0.0.40
codegen_flags: <defaults>
</compile_context>

<pallas_src>
import jax
import jax.numpy as jnp
from jax.experimental import pallas as pl
from jax.experimental.pallas import tpu as pltpu

DIM = 2            # flow dimensionality
HID = 64           # hidden width of the PyTorch module
LANE = 128         # TPU lane width; padded feature/hidden/output width
MAX_TB = 1024      # cap on batch tile (rows)

_COMPILER_PARAMS = pltpu.CompilerParams(
    dimension_semantics=("parallel",),
    vmem_limit_bytes=32 * 1024 * 1024,
)


def _elu(x):
    # ELU(alpha=1): x if x > 0 else exp(x) - 1
    return jnp.where(x > 0, x, jnp.exp(jnp.minimum(x, 0.0)) - 1.0)


def _mlp(t, x, w1t, w1x, b1, w2, b2, w3, b3, w4, b4):
    """4-layer MLP on a lane-padded activation x: (TB, LANE); t: (TB,1) or scalar."""
    h = jnp.dot(x, w1x, preferred_element_type=jnp.float32) + t * w1t + b1
    h = _elu(h)
    h = _elu(jnp.dot(h, w2, preferred_element_type=jnp.float32) + b2)
    h = _elu(jnp.dot(h, w3, preferred_element_type=jnp.float32) + b3)
    return jnp.dot(h, w4, preferred_element_type=jnp.float32) + b4


def _forward_kernel(t_ref, x_ref, w1t_ref, w1x_ref, b1_ref, w2_ref, b2_ref,
                    w3_ref, b3_ref, w4_ref, b4_ref, o_ref):
    o_ref[...] = _mlp(t_ref[...], x_ref[...],
                      w1t_ref[...], w1x_ref[...], b1_ref[...],
                      w2_ref[...], b2_ref[...], w3_ref[...], b3_ref[...],
                      w4_ref[...], b4_ref[...])


def _step_kernel(ts_ref, x_ref, w1t_ref, w1x_ref, b1_ref, w2_ref, b2_ref,
                 w3_ref, b3_ref, w4_ref, b4_ref, o_ref):
    """Fused midpoint step: x + dt * MLP(t0 + dt/2, x + MLP(t0, x) * dt/2)."""
    x = x_ref[...]
    t0 = ts_ref[0]
    dt = ts_ref[1]
    w = (w1t_ref[...], w1x_ref[...], b1_ref[...], w2_ref[...], b2_ref[...],
         w3_ref[...], b3_ref[...], w4_ref[...], b4_ref[...])
    v1 = _mlp(t0, x, *w)
    x_mid = x + v1 * (dt * 0.5)
    v2 = _mlp(t0 + dt * 0.5, x_mid, *w)
    o_ref[...] = x + dt * v2


def _pick_tile(batch):
    # Aim for >=2 grid steps (lets v7x shard the batch across its 2 TCs) while
    # keeping tiles large enough to amortize the ~0.35us per-step overhead.
    tb = min(MAX_TB, max(8, -(-batch // 2)))
    return -(-tb // 8) * 8


def _weight_specs():
    full = lambda i: (0, 0)      # weights resident across the whole grid
    return [
        pl.BlockSpec((1, LANE), full),      # w1t (t row of W1)
        pl.BlockSpec((LANE, LANE), full),   # w1x (x rows of W1, zero-padded)
        pl.BlockSpec((1, LANE), full),      # b1
        pl.BlockSpec((LANE, LANE), full),   # w2
        pl.BlockSpec((1, LANE), full),      # b2
        pl.BlockSpec((LANE, LANE), full),   # w3
        pl.BlockSpec((1, LANE), full),      # b3
        pl.BlockSpec((LANE, LANE), full),   # w4 (cols >= DIM are zero)
        pl.BlockSpec((1, LANE), full),      # b4
    ]


def prep_params(params):
    """Zero-pad raw (dim+1,h)/(h,h)/(h,dim) params to lane-aligned 128-wide tiles."""
    w1, b1, w2, b2, w3, b3, w4, b4 = params
    z = lambda r, c: jnp.zeros((r, c), jnp.float32)
    w1t = z(1, LANE).at[:, :HID].set(w1[0:1, :])
    w1x = z(LANE, LANE).at[:DIM, :HID].set(w1[1:, :])
    b1p = z(1, LANE).at[:, :HID].set(jnp.reshape(b1, (1, HID)))
    w2p = z(LANE, LANE).at[:HID, :HID].set(w2)
    b2p = z(1, LANE).at[:, :HID].set(jnp.reshape(b2, (1, HID)))
    w3p = z(LANE, LANE).at[:HID, :HID].set(w3)
    b3p = z(1, LANE).at[:, :HID].set(jnp.reshape(b3, (1, HID)))
    w4p = z(LANE, LANE).at[:HID, :DIM].set(w4)
    b4p = z(1, LANE).at[:, :DIM].set(jnp.reshape(b4, (1, DIM)))
    return (w1t, w1x, b1p, w2p, b2p, w3p, b3p, w4p, b4p)


@jax.jit
def flow_forward(t, x_t, prepped):
    """Equivalent of Flow.forward(t, x_t) = net(cat((t, x_t), -1))."""
    B = x_t.shape[0]
    tb = _pick_tile(B)
    grid = pl.cdiv(B, tb)
    bp = grid * tb
    xp = jnp.zeros((bp, LANE), jnp.float32).at[:B, :DIM].set(x_t)
    tp = jnp.zeros((bp, 1), jnp.float32).at[:B, :].set(t)

    out = pl.pallas_call(
        _forward_kernel,
        out_shape=jax.ShapeDtypeStruct((bp, LANE), jnp.float32),
        grid=(grid,),
        in_specs=[pl.BlockSpec((tb, 1), lambda i: (i, 0)),
                  pl.BlockSpec((tb, LANE), lambda i: (i, 0))] + _weight_specs(),
        out_specs=pl.BlockSpec((tb, LANE), lambda i: (i, 0)),
        compiler_params=_COMPILER_PARAMS,
    )(tp, xp, *prepped)
    return out[:B, :DIM]


@jax.jit
def flow_step(x_t, t_start, t_end, prepped):
    """Equivalent of Flow.step (midpoint ODE step) — fused into one kernel."""
    B = x_t.shape[0]
    tb = _pick_tile(B)
    grid = pl.cdiv(B, tb)
    bp = grid * tb
    xp = jnp.zeros((bp, LANE), jnp.float32).at[:B, :DIM].set(x_t)
    t0 = jnp.asarray(t_start, jnp.float32).reshape(())
    dt = jnp.asarray(t_end, jnp.float32).reshape(()) - t0
    tvec = jnp.stack([t0, dt])                      # (2,) scalars -> SMEM

    out = pl.pallas_call(
        _step_kernel,
        out_shape=jax.ShapeDtypeStruct((bp, LANE), jnp.float32),
        grid=(grid,),
        in_specs=[pl.BlockSpec(memory_space=pltpu.MemorySpace.SMEM),
                  pl.BlockSpec((tb, LANE), lambda i: (i, 0))] + _weight_specs(),
        out_specs=pl.BlockSpec((tb, LANE), lambda i: (i, 0)),
        compiler_params=_COMPILER_PARAMS,
    )(tvec, xp, *prepped)
    return out[:B, :DIM]


def init_params(key, dim=DIM, h=HID):
    """Deterministic init matching the nn.Linear shapes of Flow.__init__."""
    sizes = [(dim + 1, h), (h, h), (h, h), (h, dim)]
    params = []
    for i, (fin, fout) in enumerate(sizes):
        kw, kb = jax.random.split(jax.random.fold_in(key, i))
        bound = 1.0 / float(fin) ** 0.5
        w = jax.random.uniform(kw, (fin, fout), jnp.float32, -bound, bound)
        b = jax.random.uniform(kb, (1, fout), jnp.float32, -bound, bound)
        params += [w, b]
    return tuple(params)


def _reference_forward(t, x_t, params):
    """Pure-JAX reference of the same MLP."""
    w1, b1, w2, b2, w3, b3, w4, b4 = params
    x = jnp.concatenate([t, x_t], axis=-1)
    h = _elu(x @ w1 + b1)
    h = _elu(h @ w2 + b2)
    h = _elu(h @ w3 + b3)
    return h @ w4 + b4


def _reference_step(x_t, t_start, t_end, params):
    B = x_t.shape[0]
    ts = jnp.broadcast_to(jnp.reshape(t_start, (1, 1)), (B, 1))
    dt = t_end - t_start
    v1 = _reference_forward(ts, x_t, params)
    x_mid = x_t + v1 * dt / 2
    v2 = _reference_forward(ts + dt / 2, x_mid, params)
    return x_t + dt * v2


if __name__ == "__main__":
    key = jax.random.PRNGKey(0)
    kp, kx, kt = jax.random.split(key, 3)

    params = init_params(kp)
    prepped = prep_params(params)

    B = 16
    x_t = jax.random.normal(kx, (B, DIM), jnp.float32)
    t = jax.random.uniform(kt, (B, 1), jnp.float32)

    out = jax.block_until_ready(flow_forward(t, x_t, prepped))
    ref = _reference_forward(t, x_t, params)
    assert out.shape == (B, DIM)
    assert jnp.allclose(out, ref, atol=1e-5, rtol=1e-5)

    t0 = jnp.float32(0.0)
    t1 = jnp.float32(0.1)
    stepped = jax.block_until_ready(flow_step(x_t, t0, t1, prepped))
    ref_step = _reference_step(x_t, t0, t1, params)
    assert stepped.shape == (B, DIM)
    assert jnp.allclose(stepped, ref_step, atol=1e-5, rtol=1e-5)

    print("KERNEL_OK")
</pallas_src>

<mosaic_0001>
module attributes {stable_mosaic.version = 11 : i64} {
  func.func @_forward_kernel(%arg0: i32, %arg1: memref<8x1xf32, #tpu.memory_space<vmem>>, %arg2: memref<8x128xf32, #tpu.memory_space<vmem>>, %arg3: memref<1x128xf32, #tpu.memory_space<vmem>>, %arg4: memref<128x128xf32, #tpu.memory_space<vmem>>, %arg5: memref<1x128xf32, #tpu.memory_space<vmem>>, %arg6: memref<128x128xf32, #tpu.memory_space<vmem>>, %arg7: memref<1x128xf32, #tpu.memory_space<vmem>>, %arg8: memref<128x128xf32, #tpu.memory_space<vmem>>, %arg9: memref<1x128xf32, #tpu.memory_space<vmem>>, %arg10: memref<128x128xf32, #tpu.memory_space<vmem>>, %arg11: memref<1x128xf32, #tpu.memory_space<vmem>>, %arg12: memref<8x128xf32, #tpu.memory_space<vmem>>) attributes {dimension_semantics = [#tpu.dimension_semantics<parallel>], iteration_bounds = array<i64: 2>, scalar_prefetch = 0 : i64, scratch_operands = 0 : i64, tpu.core_type = #tpu.core_type<tc>, window_params = [{transform_indices = @transform_0, window_bounds = array<i64: 8, 1>}, {transform_indices = @transform_1, window_bounds = array<i64: 8, 128>}, {pipeline_mode = #tpu.pipeline_mode<synchronous>, transform_indices = @transform_2, window_bounds = array<i64: 1, 128>}, {pipeline_mode = #tpu.pipeline_mode<synchronous>, transform_indices = @transform_3, window_bounds = array<i64: 128, 128>}, {pipeline_mode = #tpu.pipeline_mode<synchronous>, transform_indices = @transform_4, window_bounds = array<i64: 1, 128>}, {pipeline_mode = #tpu.pipeline_mode<synchronous>, transform_indices = @transform_5, window_bounds = array<i64: 128, 128>}, {pipeline_mode = #tpu.pipeline_mode<synchronous>, transform_indices = @transform_6, window_bounds = array<i64: 1, 128>}, {pipeline_mode = #tpu.pipeline_mode<synchronous>, transform_indices = @transform_7, window_bounds = array<i64: 128, 128>}, {pipeline_mode = #tpu.pipeline_mode<synchronous>, transform_indices = @transform_8, window_bounds = array<i64: 1, 128>}, {pipeline_mode = #tpu.pipeline_mode<synchronous>, transform_indices = @transform_9, window_bounds = array<i64: 128, 128>}, {pipeline_mode = #tpu.pipeline_mode<synchronous>, transform_indices = @transform_10, window_bounds = array<i64: 1, 128>}, {transform_indices = @transform_11, window_bounds = array<i64: 8, 128>}]} {
    %c0 = arith.constant 0 : index
    %c0_0 = arith.constant 0 : index
    %0 = vector.load %arg1[%c0, %c0_0] : memref<8x1xf32, #tpu.memory_space<vmem>>, vector<8x1xf32>
    %c0_1 = arith.constant 0 : index
    %c0_2 = arith.constant 0 : index
    %1 = vector.load %arg2[%c0_1, %c0_2] : memref<8x128xf32, #tpu.memory_space<vmem>>, vector<8x128xf32>
    %c0_3 = arith.constant 0 : index
    %c0_4 = arith.constant 0 : index
    %2 = vector.load %arg3[%c0_3, %c0_4] : memref<1x128xf32, #tpu.memory_space<vmem>>, vector<1x128xf32>
    %c0_5 = arith.constant 0 : index
    %c0_6 = arith.constant 0 : index
    %3 = vector.load %arg4[%c0_5, %c0_6] : memref<128x128xf32, #tpu.memory_space<vmem>>, vector<128x128xf32>
    %c0_7 = arith.constant 0 : index
    %c0_8 = arith.constant 0 : index
    %4 = vector.load %arg5[%c0_7, %c0_8] : memref<1x128xf32, #tpu.memory_space<vmem>>, vector<1x128xf32>
    %c0_9 = arith.constant 0 : index
    %c0_10 = arith.constant 0 : index
    %5 = vector.load %arg6[%c0_9, %c0_10] : memref<128x128xf32, #tpu.memory_space<vmem>>, vector<128x128xf32>
    %c0_11 = arith.constant 0 : index
    %c0_12 = arith.constant 0 : index
    %6 = vector.load %arg7[%c0_11, %c0_12] : memref<1x128xf32, #tpu.memory_space<vmem>>, vector<1x128xf32>
    %c0_13 = arith.constant 0 : index
    %c0_14 = arith.constant 0 : index
    %7 = vector.load %arg8[%c0_13, %c0_14] : memref<128x128xf32, #tpu.memory_space<vmem>>, vector<128x128xf32>
    %c0_15 = arith.constant 0 : index
    %c0_16 = arith.constant 0 : index
    %8 = vector.load %arg9[%c0_15, %c0_16] : memref<1x128xf32, #tpu.memory_space<vmem>>, vector<1x128xf32>
    %c0_17 = arith.constant 0 : index
    %c0_18 = arith.constant 0 : index
    %9 = vector.load %arg10[%c0_17, %c0_18] : memref<128x128xf32, #tpu.memory_space<vmem>>, vector<128x128xf32>
    %c0_19 = arith.constant 0 : index
    %c0_20 = arith.constant 0 : index
    %10 = vector.load %arg11[%c0_19, %c0_20] : memref<1x128xf32, #tpu.memory_space<vmem>>, vector<1x128xf32>
    %cst = arith.constant dense<0.000000e+00> : vector<8x128xf32>
    %11 = tpu.matmul %1, %3, %cst {dimension_numbers = #tpu.dot_dimension_numbers<[1], [0], [0], [1], [0, 0, 1, 1], [], []>} : vector<8x128xf32>, vector<128x128xf32>, vector<8x128xf32> -> vector<8x128xf32>
    %12 = vector.broadcast %0 : vector<8x1xf32> to vector<8x128xf32>
    %13 = vector.broadcast %2 : vector<1x128xf32> to vector<8x128xf32>
    %14 = arith.mulf %12, %13 : vector<8x128xf32>
    %15 = arith.addf %11, %14 : vector<8x128xf32>
    %16 = vector.broadcast %4 : vector<1x128xf32> to vector<8x128xf32>
    %17 = arith.addf %15, %16 : vector<8x128xf32>
    %cst_21 = arith.constant 0.000000e+00 : f32
    %18 = vector.broadcast %cst_21 : f32 to vector<8x128xf32>
    %19 = arith.cmpf ogt, %17, %18 : vector<8x128xf32>
    %cst_22 = arith.constant 0.000000e+00 : f32
    %20 = vector.broadcast %cst_22 : f32 to vector<8x128xf32>
    %21 = arith.minimumf %17, %20 : vector<8x128xf32>
    %22 = math.exp %21 : vector<8x128xf32>
    %cst_23 = arith.constant 1.000000e+00 : f32
    %23 = vector.broadcast %cst_23 : f32 to vector<8x128xf32>
    %24 = arith.subf %22, %23 : vector<8x128xf32>
    %25 = arith.select %19, %17, %24 : vector<8x128xi1>, vector<8x128xf32>
    %cst_24 = arith.constant dense<0.000000e+00> : vector<8x128xf32>
    %26 = tpu.matmul %25, %5, %cst_24 {dimension_numbers = #tpu.dot_dimension_numbers<[1], [0], [0], [1], [0, 0, 1, 1], [], []>} : vector<8x128xf32>, vector<128x128xf32>, vector<8x128xf32> -> vector<8x128xf32>
    %27 = vector.broadcast %6 : vector<1x128xf32> to vector<8x128xf32>
    %28 = arith.addf %26, %27 : vector<8x128xf32>
    %cst_25 = arith.constant 0.000000e+00 : f32
    %29 = vector.broadcast %cst_25 : f32 to vector<8x128xf32>
    %30 = arith.cmpf ogt, %28, %29 : vector<8x128xf32>
    %cst_26 = arith.constant 0.000000e+00 : f32
    %31 = vector.broadcast %cst_26 : f32 to vector<8x128xf32>
    %32 = arith.minimumf %28, %31 : vector<8x128xf32>
    %33 = math.exp %32 : vector<8x128xf32>
    %cst_27 = arith.constant 1.000000e+00 : f32
    %34 = vector.broadcast %cst_27 : f32 to vector<8x128xf32>
    %35 = arith.subf %33, %34 : vector<8x128xf32>
    %36 = arith.select %30, %28, %35 : vector<8x128xi1>, vector<8x128xf32>
    %cst_28 = arith.constant dense<0.000000e+00> : vector<8x128xf32>
    %37 = tpu.matmul %36, %7, %cst_28 {dimension_numbers = #tpu.dot_dimension_numbers<[1], [0], [0], [1], [0, 0, 1, 1], [], []>} : vector<8x128xf32>, vector<128x128xf32>, vector<8x128xf32> -> vector<8x128xf32>
    %38 = vector.broadcast %8 : vector<1x128xf32> to vector<8x128xf32>
    %39 = arith.addf %37, %38 : vector<8x128xf32>
    %cst_29 = arith.constant 0.000000e+00 : f32
    %40 = vector.broadcast %cst_29 : f32 to vector<8x128xf32>
    %41 = arith.cmpf ogt, %39, %40 : vector<8x128xf32>
    %cst_30 = arith.constant 0.000000e+00 : f32
    %42 = vector.broadcast %cst_30 : f32 to vector<8x128xf32>
    %43 = arith.minimumf %39, %42 : vector<8x128xf32>
    %44 = math.exp %43 : vector<8x128xf32>
    %cst_31 = arith.constant 1.000000e+00 : f32
    %45 = vector.broadcast %cst_31 : f32 to vector<8x128xf32>
    %46 = arith.subf %44, %45 : vector<8x128xf32>
    %47 = arith.select %41, %39, %46 : vector<8x128xi1>, vector<8x128xf32>
    %cst_32 = arith.constant dense<0.000000e+00> : vector<8x128xf32>
    %48 = tpu.matmul %47, %9, %cst_32 {dimension_numbers = #tpu.dot_dimension_numbers<[1], [0], [0], [1], [0, 0, 1, 1], [], []>} : vector<8x128xf32>, vector<128x128xf32>, vector<8x128xf32> -> vector<8x128xf32>
    %49 = vector.broadcast %10 : vector<1x128xf32> to vector<8x128xf32>
    %50 = arith.addf %48, %49 : vector<8x128xf32>
    %c0_33 = arith.constant 0 : index
    %c0_34 = arith.constant 0 : index
    %51 = vector.load %arg12[%c0_33, %c0_34] : memref<8x128xf32, #tpu.memory_space<vmem>>, vector<8x128xf32>
    tpu.vector_store %arg12[%c0_33, %c0_34], %50 {strides = array<i32>} : memref<8x128xf32, #tpu.memory_space<vmem>>, vector<8x128xf32>,
    return
  }
  func.func @transform_0(%arg0: i32) -> (i32, i32) {
    %c0_i32 = arith.constant 0 : i32
    %c0_i32_0 = arith.constant 0 : i32
    return %arg0, %c0_i32 : i32, i32
  }
  func.func @transform_1(%arg0: i32) -> (i32, i32) {
    %c0_i32 = arith.constant 0 : i32
    %c0_i32_0 = arith.constant 0 : i32
    return %arg0, %c0_i32 : i32, i32
  }
  func.func @transform_2(%arg0: i32) -> (i32, i32) {
    %c0_i32 = arith.constant 0 : i32
    %c0_i32_0 = arith.constant 0 : i32
    %c0_i32_1 = arith.constant 0 : i32
    return %c0_i32, %c0_i32_0 : i32, i32
  }
  func.func @transform_3(%arg0: i32) -> (i32, i32) {
    %c0_i32 = arith.constant 0 : i32
    %c0_i32_0 = arith.constant 0 : i32
    %c0_i32_1 = arith.constant 0 : i32
    return %c0_i32, %c0_i32_0 : i32, i32
  }
  func.func @transform_4(%arg0: i32) -> (i32, i32) {
    %c0_i32 = arith.constant 0 : i32
    %c0_i32_0 = arith.constant 0 : i32
    %c0_i32_1 = arith.constant 0 : i32
    return %c0_i32, %c0_i32_0 : i32, i32
  }
  func.func @transform_5(%arg0: i32) -> (i32, i32) {
    %c0_i32 = arith.constant 0 : i32
    %c0_i32_0 = arith.constant 0 : i32
    %c0_i32_1 = arith.constant 0 : i32
    return %c0_i32, %c0_i32_0 : i32, i32
  }
  func.func @transform_6(%arg0: i32) -> (i32, i32) {
    %c0_i32 = arith.constant 0 : i32
    %c0_i32_0 = arith.constant 0 : i32
    %c0_i32_1 = arith.constant 0 : i32
    return %c0_i32, %c0_i32_0 : i32, i32
  }
  func.func @transform_7(%arg0: i32) -> (i32, i32) {
    %c0_i32 = arith.constant 0 : i32
    %c0_i32_0 = arith.constant 0 : i32
    %c0_i32_1 = arith.constant 0 : i32
    return %c0_i32, %c0_i32_0 : i32, i32
  }
  func.func @transform_8(%arg0: i32) -> (i32, i32) {
    %c0_i32 = arith.constant 0 : i32
    %c0_i32_0 = arith.constant 0 : i32
    %c0_i32_1 = arith.constant 0 : i32
    return %c0_i32, %c0_i32_0 : i32, i32
  }
  func.func @transform_9(%arg0: i32) -> (i32, i32) {
    %c0_i32 = arith.constant 0 : i32
    %c0_i32_0 = arith.constant 0 : i32
    %c0_i32_1 = arith.constant 0 : i32
    return %c0_i32, %c0_i32_0 : i32, i32
  }
  func.func @transform_10(%arg0: i32) -> (i32, i32) {
    %c0_i32 = arith.constant 0 : i32
    %c0_i32_0 = arith.constant 0 : i32
    %c0_i32_1 = arith.constant 0 : i32
    return %c0_i32, %c0_i32_0 : i32, i32
  }
  func.func @transform_11(%arg0: i32) -> (i32, i32) {
    %c0_i32 = arith.constant 0 : i32
    %c0_i32_0 = arith.constant 0 : i32
    return %arg0, %c0_i32 : i32, i32
  }
}

</mosaic_0001>

<bundles_post_ra>
// kernel: flow_forward.1
= control target key start
LH: loop header
LB: loop body
LE: loop exit
PB: predicated region body
PF: predicated region fallthrough
CT: control target
= control target key end

     0   :  { %16 = vsyncpa [#allocation3], 0  ;;  %s1147_s0 = inlined_call_operand.vmem [shape: f32[16,1], index: 0, kind: input, shape index: {}]   ;;  %s1148_s1 = inlined_call_operand.vmem [shape: f32[16,128], index: 1, kind: input, shape index: {}]   ;;  %s1149_s2 = inlined_call_operand.vmem [shape: f32[1,128], index: 2, kind: input, shape index: {}]   ;;  %s1150_s3 = inlined_call_operand.hbm [shape: f32[128,128], index: 3, kind: input, shape index: {}]   ;;  %s1151_s4 = inlined_call_operand.vmem [shape: f32[1,128], index: 4, kind: input, shape index: {}]   ;;  %s1152_s5 = inlined_call_operand.hbm [shape: f32[128,128], index: 5, kind: input, shape index: {}]   ;;  %s1153_s6 = inlined_call_operand.vmem [shape: f32[1,128], index: 6, kind: input, shape index: {}]   ;;  %s1154_s7 = inlined_call_operand.hbm [shape: f32[128,128], index: 7, kind: input, shape index: {}]   ;;  %s1155_s8 = inlined_call_operand.vmem [shape: f32[1,128], index: 8, kind: input, shape index: {}]   ;;  %s1156_s9 = inlined_call_operand.hbm [shape: f32[128,128], index: 9, kind: input, shape index: {}]   ;;  %s1157_s10 = inlined_call_operand.vmem [shape: f32[1,128], index: 10, kind: input, shape index: {}]   ;;  %s1158_s11 = inlined_call_operand.vmem [shape: f32[16,128], index: 11, kind: output, shape index: {}]  }
   0x1   :  { %17 = vsyncpa [#allocation5], 0 }
   0x2   :  { %18 = vsyncpa [#allocation8], 0  ;;  %s1056_s17 = smov 0  }
   0x3 LB: > { %s1062_s18 = sadd.s32 4294967295, %s987_s17   ;;  %p766_p0 = scmp.ge.s32.totalorder %s987_s17, 1  ;;  %s987_s17 = sphi %s1056_s17, %s24_s17  }
   0x4   : > { %p296_p1 = scmp.lt.s32.totalorder %s987_s17, 3  ;;  %p814_p2 = scmp.eq.s32.totalorder %s1062_s18, 0 }
   0x5   : > { %s327_s21 = sshll.u32 %s1152_s5, 4  ;;  %s310_s25 = sshll.u32 %s1150_s3, 4  ;;  %s328_s21 = int_to_ptr.hbm [resolvable:$true] %s327_s21  ;;  %s311_s25 = int_to_ptr.hbm [resolvable:$true] %s310_s25 }
   0x6   : > { %p1070_p3 = pnand %p766_p0, %p296_p1  ;;  %s989_s26 = smov [#allocation4]  }
   0x7   : > { %s329_s27 = sshll.u32 %s989_s26, 4  ;;  %s990_s29 = smov [#allocation2]   ;;  %s330_s27 = int_to_ptr.vmem [resolvable:$true] %s329_s27 }
   0x8   : > { %p801_p4 = pneg %p1070_p3  ;;  %s312_s30 = sshll.u32 %s990_s29, 4  ;;  %s313_s30 = int_to_ptr.vmem [resolvable:$true] %s312_s30 }
   0x9   : > { %s344_s14 = sshll.u32 %s1154_s7, 4  ;;  %s991_s15 = smov 128   ;;  %s345_s14 = int_to_ptr.hbm [resolvable:$true] %s344_s14 }
   0xa   : > { %p1081_p5 = pnand %p814_p2, %p801_p4  ;;  %s992_s16 = smov 8  }
   0xb   : > { %s993_s19 = smov [#allocation6]   ;;  %s361_s26 = sshll.u32 %s1156_s9, 4  ;;  %s362_s26 = int_to_ptr.hbm [resolvable:$true] %s361_s26 }
   0xc   : > { %807 = dma.hbm_to_vmem [thread:$0]  (!%p1081_p5), %s328_s21, 2048, %s330_s27, [#allocation5], %s991_s15, %s991_s15, %s992_s16  }
   0xd   : > { %804 = dma.hbm_to_vmem [thread:$0]  (!%p1081_p5), %s311_s25, 2048, %s313_s30, [#allocation3], %s991_s15, %s991_s15, %s992_s16  }
   0xe   : > { %s346_s20 = sshll.u32 %s993_s19, 4  ;;  %s994_s29 = smov [#allocation7]   ;;  %s347_s20 = int_to_ptr.vmem [resolvable:$true] %s346_s20 }
   0xf   : > { %810 = dma.hbm_to_vmem [thread:$0]  (!%p1081_p5), %s345_s14, 2048, %s347_s20, [#allocation5], %s991_s15, %s991_s15, %s992_s16  }
  0x10   : > { %s363_s12 = sshll.u32 %s994_s29, 4  ;;  %396 = sbr.rel (%p1070_p3) target bundleno = 627 (0x273), region = 64  ;;  %s364_s12 = int_to_ptr.vmem [resolvable:$true] %s363_s12 }
  0x11   : > { %813 = dma.hbm_to_vmem [thread:$0]  (!%p1081_p5), %s362_s26, 2048, %s364_s12, [#allocation8], %s991_s15, %s991_s15, %s992_s16  }
  0x15   : > { %974 = dma.done.wait (%p814_p2), [#allocation3], 2048  }
  0x16   : > { %976 = vsyncadd (%p814_p2), [#allocation3], 4294965248 }
  0x17   : > { %978 = dma.done.wait (%p814_p2), [#allocation5], 4096  }
  0x18   : > { %980 = vsyncadd (%p814_p2), [#allocation5], 4294963200 }
  0x19   : > { %982 = dma.done.wait (%p814_p2), [#allocation8], 2048  }
  0x1a   : > { %984 = vsyncadd (%p814_p2), [#allocation8], 4294965248  ;;  %p454_p6 = scmp.lt.s32.totalorder %s1062_s18, 1  ;;  %v484_v0 = vld [vmem:[#allocation2 + $0x78] sm:$0xff]  ;;  %v483_v1 = vld [vmem:[#allocation2 + $0x70] sm:$0xff]  ;;  %v995_v2 = vmov 0  }
  0x1b   : > { %546 = vmatpush.msra.mxu0 %v484_v0  ;;  %837 = vset.pattern.permute.xlu0 %v995_v2  ;;  %v482_v3 = vld [vmem:[#allocation2 + $0x68] sm:$0xff]  ;;  %v481_v4 = vld [vmem:[#allocation2 + $0x60] sm:$0xff]  ;;  %v480_v6 = vld [vmem:[#allocation2 + $0x58] sm:$0xff] }
  0x1c   : > { %s1162_s18 = smov (!%p454_p6, %s1062_s18), 1  ;;  %v501_v7 = vld [vmem:[#allocation4 + $0x78] sm:$0xff]  ;;  %v500_v8 = vld [vmem:[#allocation4 + $0x70] sm:$0xff]  ;;  %v499_v10 = vld [vmem:[#allocation4 + $0x68] sm:$0xff] }
  0x1d   : > { %s1115_s21 = sshll.u32 %s1162_s18, 3  ;;  %547 = vmatpush.msra.mxu0 %v483_v1  ;;  %v479_v9 = vld [vmem:[#allocation2 + $0x50] sm:$0xff]  ;;  %579 = vmatpush.msra.mxu1 %v501_v7  ;;  %v478_v11 = vld [vmem:[#allocation2 + $0x48] sm:$0xff]  ;;  %v498_v12 = vld [vmem:[#allocation4 + $0x60] sm:$0xff] }
  0x1e   : > { %s457_s27 = scalar_lea.vmem %s1147_s0, %s1115_s21  ;;  %v477_v13 = vld [vmem:[#allocation2 + $0x40] sm:$0xff]  ;;  %v497_v14 = vld [vmem:[#allocation4 + $0x58] sm:$0xff]  ;;  %v496_v16 = vld [vmem:[#allocation4 + $0x50] sm:$0xff]  ;;  %s461_s30 = scalar_lea.vmem %s1148_s1, %s1115_s21 }
  0x1f   : > { %548 = vmatpush.msra.mxu0 %v482_v3  ;;  %v466_v5 = vld [vmem:[%s457_s27] sm:$0xff]  ;;  %580 = vmatpush.msra.mxu1 %v500_v8  ;;  %v476_v15 = vld [vmem:[#allocation2 + $0x38] sm:$0xff]  ;;  %v475_v17 = vld [vmem:[#allocation2 + $0x30] sm:$0xff]  ;;  %s465_s25 = scalar_lea.vmem %s1158_s11, %s1115_s21 }
  0x20   : > { %539 = vperm.xlu0 %837, %v466_v5   ;;  %v474_v18 = vld [vmem:[#allocation2 + $0x28] sm:$0xff]  ;;  %v473_v19 = vld [vmem:[#allocation2 + $0x20] sm:$0xff]  ;;  %v472_v20 = vld [vmem:[#allocation2 + $0x18] sm:$0xff] }
  0x21   : > { %549 = vmatpush.msra.mxu0 %v481_v4  ;;  %581 = vmatpush.msra.mxu1 %v499_v10  ;;  %v471_v21 = vld [vmem:[#allocation2 + $0x10] sm:$0xff]  ;;  %v470_v22 = vld [vmem:[#allocation2 + $0x8] sm:$0xff]  ;;  %v469_v23 = vld [vmem:[#allocation2] sm:$0xff] }
  0x22   : > { %v467_v24 = vld [vmem:[%s461_s30] sm:$0xff]  ;;  %v495_v25 = vld [vmem:[#allocation4 + $0x48] sm:$0xff]  ;;  %v493_v27 = vld [vmem:[#allocation4 + $0x38] sm:$0xff] }
  0x23   : > { %550 = vmatpush.msra.mxu0 %v480_v6  ;;  %582 = vmatpush.msra.mxu1 %v498_v12  ;;  %v494_v26 = vld [vmem:[#allocation4 + $0x40] sm:$0xff]  ;;  %v492_v28 = vld [vmem:[#allocation4 + $0x30] sm:$0xff]  ;;  %v491_v29 = vld [vmem:[#allocation4 + $0x28] sm:$0xff] }
  0x24   : > { %v490_v30 = vld [vmem:[#allocation4 + $0x20] sm:$0xff]  ;;  %v489_v31 = vld [vmem:[#allocation4 + $0x18] sm:$0xff]  ;;  %v488_v32 = vld [vmem:[#allocation4 + $0x10] sm:$0xff] }
  0x25   : > { %551 = vmatpush.msra.mxu0 %v479_v9  ;;  %583 = vmatpush.msra.mxu1 %v497_v14  ;;  %v487_v33 = vld [vmem:[#allocation4 + $0x8] sm:$0xff]  ;;  %v486_v34 = vld [vmem:[#allocation4] sm:$0xff]  ;;  %v518_v35 = vld [vmem:[#allocation6 + $0x78] sm:$0xff] }
  0x26   : > { %v517_v36 = vld [vmem:[#allocation6 + $0x70] sm:$0xff]  ;;  %608 = vmatpush.msra.mxu2 %v518_v35  ;;  %v516_v37 = vld [vmem:[#allocation6 + $0x68] sm:$0xff]  ;;  %v515_v38 = vld [vmem:[#allocation6 + $0x60] sm:$0xff] }
  0x27   : > { %552 = vmatpush.msra.mxu0 %v478_v11  ;;  %584 = vmatpush.msra.mxu1 %v496_v16  ;;  %v838_v39 = vld [vmem:[%s1149_s2] ss:$0 sm:$0xff]  ;;  %v514_v40 = vld [vmem:[#allocation6 + $0x58] sm:$0xff]  ;;  %v513_v42 = vld [vmem:[#allocation6 + $0x50] sm:$0xff] }
  0x28   : > { %609 = vmatpush.msra.mxu2 %v517_v36  ;;  %v512_v44 = vld [vmem:[#allocation6 + $0x48] sm:$0xff]  ;;  %v839_v45 = vld [vmem:[%s1151_s4] ss:$0 sm:$0xff]  ;;  %v510_v55 = vld [vmem:[#allocation6 + $0x38] sm:$0xff] }
  0x29   : > { %553 = vmatpush.msra.mxu0 %v477_v13  ;;  %585 = vmatpush.msra.mxu1 %v495_v25  ;;  %v511_v54 = vld [vmem:[#allocation6 + $0x40] sm:$0xff]  ;;  %v509_v56 = vld [vmem:[#allocation6 + $0x30] sm:$0xff]  ;;  %v508_v57 = vld [vmem:[#allocation6 + $0x28] sm:$0xff] }
  0x2a   : > { %610 = vmatpush.msra.mxu2 %v516_v37  ;;  %v507_v58 = vld [vmem:[#allocation6 + $0x20] sm:$0xff]  ;;  %v506_v59 = vld [vmem:[#allocation6 + $0x18] sm:$0xff]  ;;  %v505_v60 = vld [vmem:[#allocation6 + $0x10] sm:$0xff] }
  0x2b   : > { %554 = vmatpush.msra.mxu0 %v476_v15  ;;  %586 = vmatpush.msra.mxu1 %v494_v26  ;;  %v504_v61 = vld [vmem:[#allocation6 + $0x8] sm:$0xff]  ;;  %v503_v62 = vld [vmem:[#allocation6] sm:$0xff]  ;;  %v535_v63 = vld [vmem:[#allocation7 + $0x78] sm:$0xff] }
  0x2c   : > { %611 = vmatpush.msra.mxu2 %v515_v38  ;;  %v534_v0 = vld [vmem:[#allocation7 + $0x70] sm:$0xff]  ;;  %637 = vmatpush.msra.mxu3 %v535_v63  ;;  %v533_v1 = vld [vmem:[#allocation7 + $0x68] sm:$0xff]  ;;  %v532_v2 = vld [vmem:[#allocation7 + $0x60] sm:$0xff] }
  0x2d   : > { %555 = vmatpush.msra.mxu0 %v475_v17  ;;  %587 = vmatpush.msra.mxu1 %v493_v27  ;;  %v531_v3 = vld [vmem:[#allocation7 + $0x58] sm:$0xff]  ;;  %v530_v4 = vld [vmem:[#allocation7 + $0x50] sm:$0xff]  ;;  %v529_v5 = vld [vmem:[#allocation7 + $0x48] sm:$0xff] }
  0x2e   : > { %612 = vmatpush.msra.mxu2 %v514_v40  ;;  %638 = vmatpush.msra.mxu3 %v534_v0  ;;  %v840_v6 = vld [vmem:[%s1153_s6] ss:$0 sm:$0xff]  ;;  %v527_v15 = vld [vmem:[#allocation7 + $0x38] sm:$0xff]  ;;  %v526_v16 = vld [vmem:[#allocation7 + $0x30] sm:$0xff] }
  0x2f   : > { %556 = vmatpush.msra.mxu0 %v474_v18  ;;  %588 = vmatpush.msra.mxu1 %v492_v28  ;;  %v528_v14 = vld [vmem:[#allocation7 + $0x40] sm:$0xff]  ;;  %v525_v17 = vld [vmem:[#allocation7 + $0x28] sm:$0xff] }
  0x30   : > { %613 = vmatpush.msra.mxu2 %v513_v42  ;;  %639 = vmatpush.msra.mxu3 %v533_v1  ;;  %v524_v18 = vld [vmem:[#allocation7 + $0x20] sm:$0xff] }
  0x31   : > { %557 = vmatpush.msra.mxu0 %v473_v19  ;;  %589 = vmatpush.msra.mxu1 %v491_v29  ;;  %v523_v19 = vld [vmem:[#allocation7 + $0x18] sm:$0xff] }
  0x32   : > { %614 = vmatpush.msra.mxu2 %v512_v44  ;;  %640 = vmatpush.msra.mxu3 %v532_v2 }
  0x33   : > { %558 = vmatpush.msra.mxu0 %v472_v20  ;;  %590 = vmatpush.msra.mxu1 %v490_v30  ;;  %v522_v20 = vld [vmem:[#allocation7 + $0x10] sm:$0xff] }
  0x34   : > { %615 = vmatpush.msra.mxu2 %v511_v54  ;;  %641 = vmatpush.msra.mxu3 %v531_v3 }
  0x35   : > { %559 = vmatpush.msra.mxu0 %v471_v21  ;;  %591 = vmatpush.msra.mxu1 %v489_v31  ;;  %v521_v21 = vld [vmem:[#allocation7 + $0x8] sm:$0xff]  ;;  %v842_v31 = vld [vmem:[%s1157_s10] ss:$0 sm:$0xff] }
  0x36   : > { %616 = vmatpush.msra.mxu2 %v510_v55  ;;  %642 = vmatpush.msra.mxu3 %v530_v4 }
  0x37   : > { %560 = vmatpush.msra.mxu0 %v470_v22  ;;  %592 = vmatpush.msra.mxu1 %v488_v32  ;;  %v520_v22 = vld [vmem:[#allocation7] sm:$0xff] }
  0x38   : > { %617 = vmatpush.msra.mxu2 %v509_v56  ;;  %643 = vmatpush.msra.mxu3 %v529_v5 }
  0x39   : > { %561 = vmatpush.msra.mxu0 %v469_v23  ;;  %593 = vmatpush.msra.mxu1 %v487_v33  ;;  %v841_v23 = vld [vmem:[%s1155_s8] ss:$0 sm:$0xff] }
  0x3a   : > { %562 = vmatmul.f32.vlgmr.msra.gmra.mxu0 %v467_v24  ;;  %618 = vmatpush.msra.mxu2 %v508_v57 }
  0x3b   : > { %594 = vmatpush.msra.mxu1 %v486_v34  ;;  %644 = vmatpush.msra.mxu3 %v528_v14 }
  0x3c   : > { %619 = vmatpush.msra.mxu2 %v507_v58 }
  0x3d   : > { %645 = vmatpush.msra.mxu3 %v527_v15 }
  0x3e   : > { %620 = vmatpush.msra.mxu2 %v506_v59 }
  0x3f   : > { %646 = vmatpush.msra.mxu3 %v526_v16 }
  0x40   : > { %621 = vmatpush.msra.mxu2 %v505_v60 }
  0x41   : > { %647 = vmatpush.msra.mxu3 %v525_v17 }
  0x42   : > { %622 = vmatpush.msra.mxu2 %v504_v61 }
  0x43   : > { %648 = vmatpush.msra.mxu3 %v524_v18 }
  0x44   : > { %623 = vmatpush.msra.mxu2 %v503_v62 }
  0x45   : > { %649 = vmatpush.msra.mxu3 %v523_v19 }
  0x47   : > { %650 = vmatpush.msra.mxu3 %v522_v20 }
  0x49   : > { %651 = vmatpush.msra.mxu3 %v521_v21 }
  0x4b   : > { %652 = vmatpush.msra.mxu3 %v520_v22 }
  0x92   : > { %v540_v41 = vpop.permute.xlu0 %539 }
  0x93   : > { %v545_v43 = vmul.f32 %v838_v39, %v540_v41 }
  0xb7   : > { %v563_v46 = vpop.f32.mrf.mxu0 }
  0xb8   : > { %v564_v47 = vadd.f32 %v563_v46, %v545_v43 }
  0xba   : > { %v569_v48 = vadd.f32 %v839_v45, %v564_v47 }
  0xbc   : > { %v571_v49 = vmin.f32 %v569_v48, 0.0  ;;  %vm570_vm0 = vcmp.gt.f32.partialorder %v569_v48, 0.0 }
  0xbe   : > { %v572_v50 = vmul.f32 1.442695, %v571_v49 }
  0xc0   : > { %843 = vpow2.f32 %v572_v50 }
  0xc6   : > { %v844_v51 = vpop.eup %843 }
  0xc7   : > { %v780_v52 = vadd.f32 -1.0, %v844_v51 }
  0xc9   : > { %v575_v53 = vsel %vm570_vm0, %v569_v48, %v780_v52 }
  0xca   : > { %595 = vmatmul.f32.vlgmr.msra.gmra.mxu1 %v575_v53 }
 0x147   : > { %v596_v7 = vpop.f32.mrf.mxu1 }
 0x148   : > { %v597_v8 = vadd.f32 %v840_v6, %v596_v7 }
 0x14a   : > { %v600_v9 = vmin.f32 %v597_v8, 0.0  ;;  %vm599_vm1 = vcmp.gt.f32.partialorder %v597_v8, 0.0 }
 0x14c   : > { %v601_v10 = vmul.f32 1.442695, %v600_v9 }
 0x14e   : > { %845 = vpow2.f32 %v601_v10 }
 0x154   : > { %v846_v11 = vpop.eup %845 }
 0x155   : > { %v781_v12 = vadd.f32 -1.0, %v846_v11 }
 0x157   : > { %v604_v13 = vsel %vm599_vm1, %v597_v8, %v781_v12 }
 0x158   : > { %624 = vmatmul.f32.vlgmr.msra.gmra.mxu2 %v604_v13 }
 0x1db   : > { %v625_v24 = vpop.f32.mrf.mxu2 }
 0x1dc   : > { %v626_v25 = vadd.f32 %v841_v23, %v625_v24 }
 0x1de   : > { %v629_v26 = vmin.f32 %v626_v25, 0.0  ;;  %vm628_vm2 = vcmp.gt.f32.partialorder %v626_v25, 0.0 }
 0x1e0   : > { %v630_v27 = vmul.f32 1.442695, %v629_v26 }
 0x1e2   : > { %847 = vpow2.f32 %v630_v27 }
 0x1e8   : > { %v848_v28 = vpop.eup %847 }
 0x1e9   : > { %v782_v29 = vadd.f32 -1.0, %v848_v28 }
 0x1eb   : > { %v633_v30 = vsel %vm628_vm2, %v626_v25, %v782_v29 }
 0x1ec   : > { %653 = vmatmul.f32.vlgmr.msra.gmra.mxu3 %v633_v30 }
 0x26f   : > { %v654_v32 = vpop.f32.mrf.mxu3 }
 0x270   : > { %v655_v33 = vadd.f32 %v842_v31, %v654_v32 }
 0x272   : > { %657 = vst [vmem:[%s465_s25] sm:$0xff] %v655_v33 }
 0x273 PF: > { %s24_s17 = sadd.s32 1, %s987_s17  }
 0x274   : > { %p21_p7 = scmp.ge.s32.totalorder %s24_s17, 4  }
 0x276   :  { %23 = sbr.rel (!%p21_p7) target bundleno = 3 (0x3), region = 114 }
 0x27b   :  { %677 = vsyncpa [#allocation3], 1 }
 0x27c   :  { %679 = vsyncpa [#allocation3 + $0x1], 1 }
 0x27d   :  { %680 = vsyncpa [#allocation5], 1 }
 0x27e   :  { %681 = vsyncpa [#allocation8], 1 }

</bundles_post_ra>
